<compile_context>
chip_gen: v7x
topology: tpu7x:2x2x1
jax: 0.10.0
libtpu: 0.0.40
codegen_flags: <defaults>
</compile_context>

<pallas_src>
import functools

import jax
import jax.numpy as jnp
from jax import lax
from jax.experimental import pallas as pl
from jax.experimental.pallas import tpu as pltpu

# ---- configuration mirroring MlpModule.__init__ ------------------------------
PARAMS = dict(
    bert_model="bert-base-cased",   # -> input_size = 768 * 2
    act_fn="tanh",
    decoder=False,
    dim_red=256,
    layers=2,
    binary_loss=False,              # MlpModel.forward default (cross-entropy) path
)
INPUT_SIZE = 768 * 2
TOP_K = 8                           # small stand-in for top_k = 64


def _apply_act(y, act):
    if act == "tanh":
        return jnp.tanh(y)
    if act == "sigmoid":
        return jax.nn.sigmoid(y)
    if act == "softplus":
        return jax.nn.softplus(y)
    return y


# ---- fused kernel: MLP trunk + final reduction layer + cross-entropy ----------
def fused_mlp_ce_kernel(*refs, n_hidden, tb, K, B, act):
    labels_ref = refs[0]                      # SMEM (B,) int32  (scalar prefetch)
    x_ref = refs[1]                           # VMEM (tb*K, D) bf16
    pos = 2
    hidden = []
    for _ in range(n_hidden):
        hidden.append((refs[pos], refs[pos + 1]))
        pos += 2
    w_last_ref, b_last_ref = refs[pos], refs[pos + 1]
    scores_ref, nll_ref = refs[pos + 2], refs[pos + 3]

    # ---- MLP trunk: bf16 matmul inputs, f32 accumulate, f32 bias + activation --
    # TODO(synk): nn.Dropout(0.1) is applied as identity (eval semantics).
    h = x_ref[...]
    for w_ref, b_ref in hidden:
        y = jnp.dot(h.astype(jnp.bfloat16), w_ref[...],
                    preferred_element_type=jnp.float32)
        h = _apply_act(y + b_ref[...], act)                      # (tb*K, dout) f32

    # ---- final (cur, 1) layer as multiply + lane reduction (lane-dense scores) -
    dlast = w_last_ref.shape[1]
    h3 = h.reshape(tb, K, dlast)
    w_row = w_last_ref[...].reshape(1, 1, dlast)
    s = jnp.sum(h3 * w_row, axis=-1) + b_last_ref[...]           # (tb, K) f32
    scores_ref[...] = s.astype(scores_ref.dtype)

    # ---- fused per-row cross-entropy (labels from SMEM scalar prefetch) --------
    m = jnp.max(s, axis=-1, keepdims=True)
    lse = m + jnp.log(jnp.sum(jnp.exp(s - m), axis=-1, keepdims=True))   # (tb, 1)
    base = pl.program_id(0) * tb
    row = lax.broadcasted_iota(jnp.int32, (tb, K), 0)
    col = lax.broadcasted_iota(jnp.int32, (tb, K), 1)
    lab = jnp.zeros((tb, K), jnp.int32)
    for j in range(tb):                        # tb is small & static -> unrolled
        idx = jnp.minimum(base + j, B - 1)     # clamp reads for padded batch rows
        lab = jnp.where(row == j, labels_ref[idx], lab)
    picked = jnp.sum(jnp.where(col == lab, s, 0.0), axis=-1, keepdims=True)
    nll_ref[...] = (lse - picked).astype(nll_ref.dtype)          # padded rows clipped


def pick_tb(B, K, target_rows=512):
    """Batches per grid step: tb == B (full) or a multiple of 8, bounded rows."""
    if B * K <= target_rows:
        return B
    tb = max(8, ((target_rows // max(K, 1)) // 8) * 8)
    return B if tb >= B else tb


def fused_mlp_ce(x_flat, labels, hidden, w_last, b_last, *, act, B, K, tb):
    M, D = x_flat.shape
    tm = tb * K
    n_hidden = len(hidden)
    grid = (pl.cdiv(B, tb),)

    in_specs = [pl.BlockSpec((tm, D), lambda i, lab: (i, 0))]
    args = [x_flat]
    for w, b in hidden:                       # constant index_map -> VMEM resident
        in_specs.append(pl.BlockSpec(w.shape, lambda i, lab: (0, 0)))
        in_specs.append(pl.BlockSpec(b.shape, lambda i, lab: (0, 0)))
        args.extend([w, b])
    in_specs.append(pl.BlockSpec(w_last.shape, lambda i, lab: (0, 0)))
    in_specs.append(pl.BlockSpec(b_last.shape, lambda i, lab: (0, 0)))
    args.extend([w_last, b_last])

    out_shape = (jax.ShapeDtypeStruct((B, K), jnp.float32),   # scores (lane-dense)
                 jax.ShapeDtypeStruct((B, 1), jnp.float32))   # per-batch NLL
    out_specs = [pl.BlockSpec((tb, K), lambda i, lab: (i, 0)),
                 pl.BlockSpec((tb, 1), lambda i, lab: (i, 0))]

    flops = sum(2 * M * w.shape[0] * w.shape[1] for w, _ in hidden)
    flops += 2 * M * w_last.shape[1]
    transcendentals = M * sum(w.shape[1] for w, _ in hidden) + M + B
    bytes_accessed = (
        M * D * x_flat.dtype.itemsize
        + sum(w.size * w.dtype.itemsize + b.size * b.dtype.itemsize for w, b in hidden)
        + w_last.size * w_last.dtype.itemsize + b_last.size * b_last.dtype.itemsize
        + B * K * 4 + B * 4 + B * labels.dtype.itemsize)

    kernel = functools.partial(fused_mlp_ce_kernel, n_hidden=n_hidden,
                               tb=tb, K=K, B=B, act=act)
    return pl.pallas_call(
        kernel,
        out_shape=out_shape,
        grid_spec=pltpu.PrefetchScalarGridSpec(
            num_scalar_prefetch=1, grid=grid,
            in_specs=in_specs, out_specs=out_specs),
        compiler_params=pltpu.CompilerParams(
            dimension_semantics=("parallel",),          # shard M across TCs (v7x)
            vmem_limit_bytes=32 * 1024 * 1024),         # explicit, v7x-safe budget
        cost_estimate=pl.CostEstimate(flops=int(flops),
                                      transcendentals=int(transcendentals),
                                      bytes_accessed=int(bytes_accessed)),
    )(labels, *args)


# ---- parameter construction (mirrors MlpModule.__init__ layer stacking) -------
def build_layer_dims(params, input_size):
    dims = []
    cur = input_size
    if not params["decoder"]:
        if params["dim_red"]:
            for _ in range(params["layers"]):
                dims.append((int(cur), int(params["dim_red"])))
                cur = params["dim_red"]
        else:
            for _ in range(params["layers"]):
                dims.append((int(cur), int(cur)))
    else:
        dims.append((int(cur), int(params["dim_red"])))
        cur = params["dim_red"]
        for _ in range(params["layers"] - 1):
            dims.append((int(cur), int(cur / 2)))
            cur /= 2
    dims.append((int(cur), 1))
    return dims


def init_linear(key, din, dout):
    # matches torch.nn.Linear default U(-1/sqrt(fan_in), 1/sqrt(fan_in)) scaling
    kw, kb = jax.random.split(key)
    bound = 1.0 / (din ** 0.5)
    w = jax.random.uniform(kw, (din, dout), jnp.float32, -bound, bound)
    b = jax.random.uniform(kb, (dout,), jnp.float32, -bound, bound)
    return w, b


def prepare_params(weights):
    """(din, dout) f32 params -> kernel layout: bf16 hidden W, (1, cur) last row."""
    hidden = [(w.astype(jnp.bfloat16), b.reshape(1, -1).astype(jnp.float32))
              for w, b in weights[:-1]]
    w_last, b_last = weights[-1]
    w_last = w_last.reshape(1, -1).astype(jnp.float32)   # lane-dense row vector
    b_last = b_last.reshape(1, 1).astype(jnp.float32)
    return hidden, w_last, b_last


# ---- forward pass (MlpModel.forward, non-binary-loss path) --------------------
@functools.partial(jax.jit, static_argnames=("act",))
def mlp_model_forward(x, label_input, weights, act):
    B, K = x.shape[0], x.shape[1]
    D = 1
    for d in x.shape[2:]:
        D *= d                                          # torch.flatten(start_dim=2)
    x_flat = x.reshape(B * K, D).astype(jnp.bfloat16)   # bf16 MXU inputs
    hidden, w_last, b_last = prepare_params(weights)
    tb = pick_tb(B, K)
    scores, nll = fused_mlp_ce(x_flat, label_input.astype(jnp.int32),
                               hidden, w_last, b_last, act=act, B=B, K=K, tb=tb)
    loss = jnp.sum(nll[:, 0]) / B                       # mean cross-entropy over B
    return loss, scores


# ---- pure-JAX reference (f32) for a sanity check ------------------------------
def reference_forward(x, labels, weights, act):
    B, K = x.shape[0], x.shape[1]
    h = x.reshape(B * K, -1)
    for w, b in weights[:-1]:
        h = _apply_act(h @ w + b, act)
    w, b = weights[-1]
    scores = (h @ w + b).reshape(B, K)
    lse = jax.scipy.special.logsumexp(scores, axis=-1)
    nll = lse - scores[jnp.arange(B), labels]
    return jnp.mean(nll), scores


# ---- demo ---------------------------------------------------------------------
if __name__ == "__main__":
    key = jax.random.PRNGKey(0)
    kx, kl, kp = jax.random.split(key, 3)

    B, K, S, H = 2, TOP_K, 2, 768          # S*H == INPUT_SIZE == 1536
    x = jax.random.normal(kx, (B, K, S, H), dtype=jnp.float32)
    label_input = jax.random.randint(kl, (B,), 0, K, dtype=jnp.int32)

    dims = build_layer_dims(PARAMS, INPUT_SIZE)   # [(1536,256),(256,256),(256,1)]
    keys = jax.random.split(kp, len(dims))
    weights = [init_linear(k, din, dout) for k, (din, dout) in zip(keys, dims)]

    loss, scores = mlp_model_forward(x, label_input, weights, PARAMS["act_fn"])
    jax.block_until_ready((loss, scores))

    ref_loss, ref_scores = reference_forward(x, label_input, weights, PARAMS["act_fn"])
    assert scores.shape == (B, K) and loss.shape == ()
    assert bool(jnp.all(jnp.isfinite(scores))) and bool(jnp.isfinite(loss))
    assert bool(jnp.allclose(scores, ref_scores, atol=5e-2, rtol=5e-2))
    assert bool(jnp.allclose(loss, ref_loss, atol=5e-2, rtol=5e-2))
    print("KERNEL_OK")
</pallas_src>

<mosaic_0001>
module attributes {stable_mosaic.version = 11 : i64} {
  func.func @fused_mlp_ce_kernel(%arg0: i32, %arg1: memref<2xi32, #tpu.memory_space<smem>>, %arg2: memref<16x1536xbf16, #tpu.memory_space<vmem>>, %arg3: memref<1536x256xbf16, #tpu.memory_space<vmem>>, %arg4: memref<1x256xf32, #tpu.memory_space<vmem>>, %arg5: memref<256x256xbf16, #tpu.memory_space<vmem>>, %arg6: memref<1x256xf32, #tpu.memory_space<vmem>>, %arg7: memref<1x256xf32, #tpu.memory_space<vmem>>, %arg8: memref<1x1xf32, #tpu.memory_space<vmem>>, %arg9: memref<2x8xf32, #tpu.memory_space<vmem>>, %arg10: memref<2x1xf32, #tpu.memory_space<vmem>>) attributes {dimension_semantics = [#tpu.dimension_semantics<parallel>], iteration_bounds = array<i64: 1>, scalar_prefetch = 1 : i64, scratch_operands = 0 : i64, tpu.core_type = #tpu.core_type<tc>, window_params = [{transform_indices = @transform_0, window_bounds = array<i64: 16, 1536>}, {pipeline_mode = #tpu.pipeline_mode<synchronous>, transform_indices = @transform_1, window_bounds = array<i64: 1536, 256>}, {pipeline_mode = #tpu.pipeline_mode<synchronous>, transform_indices = @transform_2, window_bounds = array<i64: 1, 256>}, {pipeline_mode = #tpu.pipeline_mode<synchronous>, transform_indices = @transform_3, window_bounds = array<i64: 256, 256>}, {pipeline_mode = #tpu.pipeline_mode<synchronous>, transform_indices = @transform_4, window_bounds = array<i64: 1, 256>}, {pipeline_mode = #tpu.pipeline_mode<synchronous>, transform_indices = @transform_5, window_bounds = array<i64: 1, 256>}, {pipeline_mode = #tpu.pipeline_mode<synchronous>, transform_indices = @transform_6, window_bounds = array<i64: 1, 1>}, {transform_indices = @transform_7, window_bounds = array<i64: 2, 8>}, {transform_indices = @transform_8, window_bounds = array<i64: 2, 1>}]} {
    %c0 = arith.constant 0 : index
    %c0_0 = arith.constant 0 : index
    %0 = vector.load %arg2[%c0, %c0_0] : memref<16x1536xbf16, #tpu.memory_space<vmem>>, vector<16x1536xbf16>
    %c0_1 = arith.constant 0 : index
    %c0_2 = arith.constant 0 : index
    %1 = vector.load %arg3[%c0_1, %c0_2] : memref<1536x256xbf16, #tpu.memory_space<vmem>>, vector<1536x256xbf16>
    %cst = arith.constant dense<0.000000e+00> : vector<16x256xf32>
    %2 = tpu.matmul %0, %1, %cst {dimension_numbers = #tpu.dot_dimension_numbers<[1], [0], [0], [1], [0, 0, 1, 1], [], []>} : vector<16x1536xbf16>, vector<1536x256xbf16>, vector<16x256xf32> -> vector<16x256xf32>
    %c0_3 = arith.constant 0 : index
    %c0_4 = arith.constant 0 : index
    %3 = vector.load %arg4[%c0_3, %c0_4] : memref<1x256xf32, #tpu.memory_space<vmem>>, vector<1x256xf32>
    %4 = vector.broadcast %3 : vector<1x256xf32> to vector<16x256xf32>
    %5 = arith.addf %2, %4 : vector<16x256xf32>
    %6 = math.tanh %5 : vector<16x256xf32>
    %7 = arith.truncf %6 : vector<16x256xf32> to vector<16x256xbf16>
    %c0_5 = arith.constant 0 : index
    %c0_6 = arith.constant 0 : index
    %8 = vector.load %arg5[%c0_5, %c0_6] : memref<256x256xbf16, #tpu.memory_space<vmem>>, vector<256x256xbf16>
    %cst_7 = arith.constant dense<0.000000e+00> : vector<16x256xf32>
    %9 = tpu.matmul %7, %8, %cst_7 {dimension_numbers = #tpu.dot_dimension_numbers<[1], [0], [0], [1], [0, 0, 1, 1], [], []>} : vector<16x256xbf16>, vector<256x256xbf16>, vector<16x256xf32> -> vector<16x256xf32>
    %c0_8 = arith.constant 0 : index
    %c0_9 = arith.constant 0 : index
    %10 = vector.load %arg6[%c0_8, %c0_9] : memref<1x256xf32, #tpu.memory_space<vmem>>, vector<1x256xf32>
    %11 = vector.broadcast %10 : vector<1x256xf32> to vector<16x256xf32>
    %12 = arith.addf %9, %11 : vector<16x256xf32>
    %13 = math.tanh %12 : vector<16x256xf32>
    %14 = vector.shape_cast %13 : vector<16x256xf32> to vector<2x8x256xf32>
    %c0_10 = arith.constant 0 : index
    %c0_11 = arith.constant 0 : index
    %15 = vector.load %arg7[%c0_10, %c0_11] : memref<1x256xf32, #tpu.memory_space<vmem>>, vector<1x256xf32>
    %16 = vector.shape_cast %15 : vector<1x256xf32> to vector<1x1x256xf32>
    %17 = vector.broadcast %16 : vector<1x1x256xf32> to vector<2x8x256xf32>
    %18 = arith.mulf %14, %17 : vector<2x8x256xf32>
    %cst_12 = arith.constant dense<0.000000e+00> : vector<2x8xf32>
    %19 = vector.multi_reduction <add>, %18, %cst_12 [2] : vector<2x8x256xf32> to vector<2x8xf32>
    %c0_13 = arith.constant 0 : index
    %c0_14 = arith.constant 0 : index
    %20 = vector.load %arg8[%c0_13, %c0_14] : memref<1x1xf32, #tpu.memory_space<vmem>>, vector<1x1xf32>
    %21 = vector.broadcast %20 : vector<1x1xf32> to vector<2x8xf32>
    %22 = arith.addf %19, %21 : vector<2x8xf32>
    %c0_15 = arith.constant 0 : index
    %c0_16 = arith.constant 0 : index
    %23 = vector.load %arg9[%c0_15, %c0_16] : memref<2x8xf32, #tpu.memory_space<vmem>>, vector<2x8xf32>
    tpu.vector_store %arg9[%c0_15, %c0_16], %22 {strides = array<i32>} : memref<2x8xf32, #tpu.memory_space<vmem>>, vector<2x8xf32>,
    %cst_17 = arith.constant dense<0xFF800000> : vector<2xf32>
    %24 = vector.multi_reduction <maximumf>, %22, %cst_17 [1] : vector<2x8xf32> to vector<2xf32>
    %25 = vector.shape_cast %24 : vector<2xf32> to vector<2x1xf32>
    %26 = vector.broadcast %25 : vector<2x1xf32> to vector<2x8xf32>
    %27 = arith.subf %22, %26 : vector<2x8xf32>
    %28 = math.exp %27 : vector<2x8xf32>
    %cst_18 = arith.constant dense<0.000000e+00> : vector<2xf32>
    %29 = vector.multi_reduction <add>, %28, %cst_18 [1] : vector<2x8xf32> to vector<2xf32>
    %30 = vector.shape_cast %29 : vector<2xf32> to vector<2x1xf32>
    %31 = math.log %30 : vector<2x1xf32>
    %32 = arith.addf %25, %31 : vector<2x1xf32>
    %c2_i32 = arith.constant 2 : i32
    %33 = arith.muli %arg0, %c2_i32 : i32
    %34 = tpu.iota {dimensions = array<i32: 0>} : vector<2x8xi32>
    %35 = tpu.iota {dimensions = array<i32: 1>} : vector<2x8xi32>
    %c0_i32 = arith.constant 0 : i32
    %36 = vector.broadcast %c0_i32 : i32 to vector<2x8xi32>
    %c0_i32_19 = arith.constant 0 : i32
    %37 = arith.addi %33, %c0_i32_19 : i32
    %c1_i32 = arith.constant 1 : i32
    %38 = arith.minsi %37, %c1_i32 : i32
    %c0_i32_20 = arith.constant 0 : i32
    %39 = vector.broadcast %c0_i32_20 : i32 to vector<2x8xi32>
    %40 = arith.cmpi eq, %34, %39 : vector<2x8xi32>
    %41 = arith.index_cast %38 : i32 to index
    %42 = memref.load %arg1[%41] : memref<2xi32, #tpu.memory_space<smem>>
    %43 = vector.broadcast %42 : i32 to vector<2x8xi32>
    %44 = arith.select %40, %43, %36 : vector<2x8xi1>, vector<2x8xi32>
    %c1_i32_21 = arith.constant 1 : i32
    %45 = arith.addi %33, %c1_i32_21 : i32
    %c1_i32_22 = arith.constant 1 : i32
    %46 = arith.minsi %45, %c1_i32_22 : i32
    %c1_i32_23 = arith.constant 1 : i32
    %47 = vector.broadcast %c1_i32_23 : i32 to vector<2x8xi32>
    %48 = arith.cmpi eq, %34, %47 : vector<2x8xi32>
    %49 = arith.index_cast %46 : i32 to index
    %50 = memref.load %arg1[%49] : memref<2xi32, #tpu.memory_space<smem>>
    %51 = vector.broadcast %50 : i32 to vector<2x8xi32>
    %52 = arith.select %48, %51, %44 : vector<2x8xi1>, vector<2x8xi32>
    %53 = arith.cmpi eq, %35, %52 : vector<2x8xi32>
    %cst_24 = arith.constant 0.000000e+00 : f32
    %54 = vector.broadcast %cst_24 : f32 to vector<2x8xf32>
    %55 = arith.select %53, %22, %54 : vector<2x8xi1>, vector<2x8xf32>
    %cst_25 = arith.constant dense<0.000000e+00> : vector<2xf32>
    %56 = vector.multi_reduction <add>, %55, %cst_25 [1] : vector<2x8xf32> to vector<2xf32>
    %57 = vector.shape_cast %56 : vector<2xf32> to vector<2x1xf32>
    %58 = arith.subf %32, %57 : vector<2x1xf32>
    %c0_26 = arith.constant 0 : index
    %c0_27 = arith.constant 0 : index
    %59 = vector.load %arg10[%c0_26, %c0_27] : memref<2x1xf32, #tpu.memory_space<vmem>>, vector<2x1xf32>
    tpu.vector_store %arg10[%c0_26, %c0_27], %58 {strides = array<i32>} : memref<2x1xf32, #tpu.memory_space<vmem>>, vector<2x1xf32>,
    return
  }
  func.func @transform_0(%arg0: i32, %arg1: memref<2xi32, #tpu.memory_space<smem>>) -> (i32, i32) {
    %c0_i32 = arith.constant 0 : i32
    %c0_i32_0 = arith.constant 0 : i32
    return %arg0, %c0_i32 : i32, i32
  }
  func.func @transform_1(%arg0: i32, %arg1: memref<2xi32, #tpu.memory_space<smem>>) -> (i32, i32) {
    %c0_i32 = arith.constant 0 : i32
    %c0_i32_0 = arith.constant 0 : i32
    %c0_i32_1 = arith.constant 0 : i32
    return %c0_i32, %c0_i32_0 : i32, i32
  }
  func.func @transform_2(%arg0: i32, %arg1: memref<2xi32, #tpu.memory_space<smem>>) -> (i32, i32) {
    %c0_i32 = arith.constant 0 : i32
    %c0_i32_0 = arith.constant 0 : i32
    %c0_i32_1 = arith.constant 0 : i32
    return %c0_i32, %c0_i32_0 : i32, i32
  }
  func.func @transform_3(%arg0: i32, %arg1: memref<2xi32, #tpu.memory_space<smem>>) -> (i32, i32) {
    %c0_i32 = arith.constant 0 : i32
    %c0_i32_0 = arith.constant 0 : i32
    %c0_i32_1 = arith.constant 0 : i32
    return %c0_i32, %c0_i32_0 : i32, i32
  }
  func.func @transform_4(%arg0: i32, %arg1: memref<2xi32, #tpu.memory_space<smem>>) -> (i32, i32) {
    %c0_i32 = arith.constant 0 : i32
    %c0_i32_0 = arith.constant 0 : i32
    %c0_i32_1 = arith.constant 0 : i32
    return %c0_i32, %c0_i32_0 : i32, i32
  }
  func.func @transform_5(%arg0: i32, %arg1: memref<2xi32, #tpu.memory_space<smem>>) -> (i32, i32) {
    %c0_i32 = arith.constant 0 : i32
    %c0_i32_0 = arith.constant 0 : i32
    %c0_i32_1 = arith.constant 0 : i32
    return %c0_i32, %c0_i32_0 : i32, i32
  }
  func.func @transform_6(%arg0: i32, %arg1: memref<2xi32, #tpu.memory_space<smem>>) -> (i32, i32) {
    %c0_i32 = arith.constant 0 : i32
    %c0_i32_0 = arith.constant 0 : i32
    %c0_i32_1 = arith.constant 0 : i32
    return %c0_i32, %c0_i32_0 : i32, i32
  }
  func.func @transform_7(%arg0: i32, %arg1: memref<2xi32, #tpu.memory_space<smem>>) -> (i32, i32) {
    %c0_i32 = arith.constant 0 : i32
    %c0_i32_0 = arith.constant 0 : i32
    return %arg0, %c0_i32 : i32, i32
  }
  func.func @transform_8(%arg0: i32, %arg1: memref<2xi32, #tpu.memory_space<smem>>) -> (i32, i32) {
    %c0_i32 = arith.constant 0 : i32
    %c0_i32_0 = arith.constant 0 : i32
    return %arg0, %c0_i32 : i32, i32
  }
}

</mosaic_0001>

<bundles_post_ra>
// kernel: mlp_model_forward.1
= control target key start
LH: loop header
LB: loop body
LE: loop exit
PB: predicated region body
PF: predicated region fallthrough
CT: control target
= control target key end

     0   :  { %s3425_s0 = inlined_call_operand.vmem [shape: s32[2], index: 0, kind: input, shape index: {}]   ;;  %s3426_s1 = inlined_call_operand.vmem [shape: bf16[16,1536], index: 1, kind: input, shape index: {}]   ;;  %s3427_s2 = inlined_call_operand.vmem [shape: bf16[1536,256], index: 2, kind: input, shape index: {}]   ;;  %s3428_s3 = inlined_call_operand.vmem [shape: f32[1,256], index: 3, kind: input, shape index: {}]   ;;  %s3429_s4 = inlined_call_operand.vmem [shape: bf16[256,256], index: 4, kind: input, shape index: {}]   ;;  %s3430_s5 = inlined_call_operand.vmem [shape: f32[1,256], index: 5, kind: input, shape index: {}]   ;;  %s3431_s6 = inlined_call_operand.vmem [shape: f32[1,256], index: 6, kind: input, shape index: {}]   ;;  %s3432_s8 = inlined_call_operand.hbm [shape: f32[2,8], index: 8, kind: output, shape index: {0}]   ;;  %s3433_s9 = inlined_call_operand.vmem [shape: f32[2,1], index: 9, kind: output, shape index: {1}]   ;;  %s3434_s7 = inlined_call_operand.<no memory space> [shape: f32[1,1], index: 7, kind: input, shape index: {}]  }
   0x1   :  { %s15_s11 = sshll.u32 %s3425_s0, 4  ;;  %v19_v0 = vstv %s3434_s7  ;;  %s16_s11 = int_to_ptr.vmem [resolvable:$true] %s15_s11 }
   0x2   :  { %20 = vst [vmem:[#allocation4] sm:$0x1] %v19_v0  ;;  %s2569_s14 = scalar_lea.vmem %s16_s11, 16  ;;  %p2574_p1 = scmp.lt.s32.totalorder %s16_s11, %s16_s11 }
   0x3   :  { %p2570_p0 = scmp.ne.s32.totalorder %s16_s11, %s2569_s14  ;;  %p2575_p2 = scmp.lt.s32.totalorder %s2569_s14, %s2569_s14 }
   0x5   :  { %p2576_p3 = por %p2575_p2, %p2574_p1 }
   0x7   :  { %p2577_p4 = pnand %p2576_p3, %p2570_p0 }
   0x9   :  { %2580 = shalt.err (!%p2577_p4)  }
   0xa   :  { %s2607_s15 = smov [#allocation3]  }
   0xb   :  { %18 = dma.vmem_to_smem %s16_s11, 16, %s2607_s15, [#allocation2] }
   0xc   :  { %2603 = dma.done.wait [#allocation2], 16 }
   0xd   :  { %2604 = vsyncadd [#allocation2], 4294967280 }
   0xe   :  { %22 = sfence }
   0xf   :  { %v2193_v1 = vld [vmem:[%s3427_s2 + $0x204] ss:$8 sps:$4 sm:$0xff]   ;;  %v2195_v2 = vld [vmem:[%s3427_s2 + $0x200] ss:$8 sps:$4 sm:$0xff]   ;;  %v2196_v3 = vld [vmem:[%s3427_s2 + $0x214] ss:$8 sps:$4 sm:$0xff]  }
  0x10   :  { %1360 = vmatprep.subr.bf16.mxu0 %v2193_v1  ;;  %v2198_v4 = vld [vmem:[%s3427_s2 + $0x210] ss:$8 sps:$4 sm:$0xff]   ;;  %v2199_v5 = vld [vmem:[%s3427_s2 + $0x224] ss:$8 sps:$4 sm:$0xff]   ;;  %v2201_v6 = vld [vmem:[%s3427_s2 + $0x220] ss:$8 sps:$4 sm:$0xff]  }
  0x11   :  { %1361 = vmatpush1.bf16.msra.mxu0 %v2195_v2  ;;  %v2202_v7 = vld [vmem:[%s3427_s2 + $0x234] ss:$8 sps:$4 sm:$0xff]   ;;  %v2204_v8 = vld [vmem:[%s3427_s2 + $0x230] ss:$8 sps:$4 sm:$0xff]   ;;  %v2205_v9 = vld [vmem:[%s3427_s2 + $0x244] ss:$8 sps:$4 sm:$0xff]  }
  0x12   :  { %1362 = vmatprep.subr.bf16.mxu0 %v2196_v3  ;;  %v2207_v10 = vld [vmem:[%s3427_s2 + $0x240] ss:$8 sps:$4 sm:$0xff]   ;;  %v2208_v11 = vld [vmem:[%s3427_s2 + $0x254] ss:$8 sps:$4 sm:$0xff]   ;;  %v2210_v12 = vld [vmem:[%s3427_s2 + $0x250] ss:$8 sps:$4 sm:$0xff]  }
  0x13   :  { %v2211_v13 = vld [vmem:[%s3427_s2 + $0x264] ss:$8 sps:$4 sm:$0xff]   ;;  %v2213_v15 = vld [vmem:[%s3427_s2 + $0x260] ss:$8 sps:$4 sm:$0xff]   ;;  %v2244_v17 = vld [vmem:[%s3427_s2 + $0x14] ss:$8 sps:$4 sm:$0xff]  }
  0x14   :  { %v2238_v14 = vld [vmem:[%s3427_s2 + $0x4] ss:$8 sps:$4 sm:$0xff]   ;;  %v2242_v16 = vld [vmem:[%s3427_s2] ss:$8 sps:$4 sm:$0xff]   ;;  %v2214_v18 = vld [vmem:[%s3427_s2 + $0x274] ss:$8 sps:$4 sm:$0xff]  }
  0x15   :  { %1363 = vmatpush1.bf16.msra.mxu0 %v2198_v4  ;;  %1274 = vmatprep.subr.bf16.mxu1 %v2238_v14  ;;  %v2248_v19 = vld [vmem:[%s3426_s1 + $0x14] ss:$48 sps:$4 sm:$0xff]   ;;  %v2216_v20 = vld [vmem:[%s3427_s2 + $0x270] ss:$8 sps:$4 sm:$0xff]   ;;  %v2258_v24 = vld [vmem:[%s3427_s2 + $0x20] ss:$8 sps:$4 sm:$0xff]  }
  0x16   :  { %1364 = vmatprep.subr.bf16.mxu0 %v2199_v5  ;;  %1275 = vmatpush1.bf16.msra.mxu1 %v2242_v16  ;;  %v2252_v21 = vld [vmem:[%s3427_s2 + $0x10] ss:$8 sps:$4 sm:$0xff]   ;;  %v2253_v22 = vld [vmem:[%s3427_s2 + $0x24] ss:$8 sps:$4 sm:$0xff]   ;;  %v2259_v25 = vld [vmem:[%s3427_s2 + $0x34] ss:$8 sps:$4 sm:$0xff]  }
  0x17   :  { %1276 = vmatprep.subr.bf16.mxu1 %v2244_v17  ;;  %1392 = vmatprep.mubr.bf16.mxu0 %v2248_v19  ;;  %v2217_v23 = vld [vmem:[%s3427_s2 + $0x284] ss:$8 sps:$4 sm:$0xff]   ;;  %v2219_v26 = vld [vmem:[%s3427_s2 + $0x280] ss:$8 sps:$4 sm:$0xff]   ;;  %v2220_v27 = vld [vmem:[%s3427_s2 + $0x294] ss:$8 sps:$4 sm:$0xff]  }
  0x18   :  { %v2264_v28 = vld [vmem:[%s3427_s2 + $0x30] ss:$8 sps:$4 sm:$0xff]   ;;  %v2265_v29 = vld [vmem:[%s3427_s2 + $0x44] ss:$8 sps:$4 sm:$0xff]   ;;  %v2270_v32 = vld [vmem:[%s3427_s2 + $0x40] ss:$8 sps:$4 sm:$0xff]  }
  0x19   :  { %1365 = vmatpush1.bf16.msra.mxu0 %v2201_v6  ;;  %v2222_v30 = vld [vmem:[%s3427_s2 + $0x290] ss:$8 sps:$4 sm:$0xff]   ;;  %v2223_v31 = vld [vmem:[%s3427_s2 + $0x2a4] ss:$8 sps:$4 sm:$0xff]   ;;  %v2271_v33 = vld [vmem:[%s3427_s2 + $0x54] ss:$8 sps:$4 sm:$0xff]  }
  0x1a   :  { %1366 = vmatprep.subr.bf16.mxu0 %v2202_v7  ;;  %1277 = vmatpush1.bf16.msra.mxu1 %v2252_v21  ;;  %v2225_v34 = vld [vmem:[%s3427_s2 + $0x2a0] ss:$8 sps:$4 sm:$0xff]   ;;  %v2226_v35 = vld [vmem:[%s3427_s2 + $0x2b4] ss:$8 sps:$4 sm:$0xff]   ;;  %v2276_v36 = vld [vmem:[%s3427_s2 + $0x50] ss:$8 sps:$4 sm:$0xff]  }
  0x1b   :  { %1278 = vmatprep.subr.bf16.mxu1 %v2253_v22  ;;  %v2277_v37 = vld [vmem:[%s3427_s2 + $0x64] ss:$8 sps:$4 sm:$0xff]   ;;  %v2228_v38 = vld [vmem:[%s3427_s2 + $0x2b0] ss:$8 sps:$4 sm:$0xff]   ;;  %v2282_v40 = vld [vmem:[%s3427_s2 + $0x60] ss:$8 sps:$4 sm:$0xff]  }
  0x1c   :  { %v2229_v39 = vld [vmem:[%s3427_s2 + $0x2c4] ss:$8 sps:$4 sm:$0xff]   ;;  %v2283_v41 = vld [vmem:[%s3427_s2 + $0x74] ss:$8 sps:$4 sm:$0xff]   ;;  %v2231_v42 = vld [vmem:[%s3427_s2 + $0x2c0] ss:$8 sps:$4 sm:$0xff]  }
  0x1d   :  { %1367 = vmatpush1.bf16.msra.mxu0 %v2204_v8  ;;  %v2232_v43 = vld [vmem:[%s3427_s2 + $0x2d4] ss:$8 sps:$4 sm:$0xff]   ;;  %v2288_v44 = vld [vmem:[%s3427_s2 + $0x70] ss:$8 sps:$4 sm:$0xff]   ;;  %v2289_v45 = vld [vmem:[%s3427_s2 + $0x84] ss:$8 sps:$4 sm:$0xff]  }
  0x1e   :  { %1368 = vmatprep.subr.bf16.mxu0 %v2205_v9  ;;  %1279 = vmatpush1.bf16.msra.mxu1 %v2258_v24  ;;  %v2234_v46 = vld [vmem:[%s3427_s2 + $0x2d0] ss:$8 sps:$4 sm:$0xff]   ;;  %v2235_v47 = vld [vmem:[%s3427_s2 + $0x2e4] ss:$8 sps:$4 sm:$0xff]   ;;  %v2294_v48 = vld [vmem:[%s3427_s2 + $0x80] ss:$8 sps:$4 sm:$0xff]  }
  0x1f   :  { %1280 = vmatprep.subr.bf16.mxu1 %v2259_v25  ;;  %v2295_v49 = vld [vmem:[%s3427_s2 + $0x94] ss:$8 sps:$4 sm:$0xff]   ;;  %v2237_v50 = vld [vmem:[%s3427_s2 + $0x2e0] ss:$8 sps:$4 sm:$0xff]   ;;  %v2300_v52 = vld [vmem:[%s3427_s2 + $0x90] ss:$8 sps:$4 sm:$0xff]  }
  0x20   :  { %v2240_v51 = vld [vmem:[%s3427_s2 + $0x2f4] ss:$8 sps:$4 sm:$0xff]   ;;  %v2301_v53 = vld [vmem:[%s3427_s2 + $0xa4] ss:$8 sps:$4 sm:$0xff]   ;;  %v2243_v54 = vld [vmem:[%s3427_s2 + $0x2f0] ss:$8 sps:$4 sm:$0xff]  }
  0x21   :  { %1369 = vmatpush1.bf16.msra.mxu0 %v2207_v10  ;;  %v2251_v55 = vld [vmem:[%s3427_s2 + $0x304] ss:$8 sps:$4 sm:$0xff]   ;;  %v2306_v56 = vld [vmem:[%s3427_s2 + $0xa0] ss:$8 sps:$4 sm:$0xff]   ;;  %v2307_v57 = vld [vmem:[%s3427_s2 + $0xb4] ss:$8 sps:$4 sm:$0xff]  }
  0x22   :  { %1370 = vmatprep.subr.bf16.mxu0 %v2208_v11  ;;  %1281 = vmatpush1.bf16.msra.mxu1 %v2264_v28  ;;  %v2246_v58 = vld [vmem:[%s3426_s1 + $0x10] ss:$48 sps:$4 sm:$0xff]   ;;  %v2257_v60 = vld [vmem:[%s3427_s2 + $0x314] ss:$8 sps:$4 sm:$0xff]   ;;  %v2313_v62 = vld [vmem:[%s3427_s2 + $0xc4] ss:$8 sps:$4 sm:$0xff]  }
  0x23   :  { %1282 = vmatprep.subr.bf16.mxu1 %v2265_v29  ;;  %v2249_v59 = vld [vmem:[%s3427_s2 + $0x300] ss:$8 sps:$4 sm:$0xff]   ;;  %v2312_v61 = vld [vmem:[%s3427_s2 + $0xb0] ss:$8 sps:$4 sm:$0xff]   ;;  %v2339_v63 = vld [vmem:[%s3426_s1 + $0x4] ss:$48 sps:$4 sm:$0xff]  }
  0x24   :  { %v2255_v0 = vld [vmem:[%s3427_s2 + $0x310] ss:$8 sps:$4 sm:$0xff]   ;;  %v2263_v1 = vld [vmem:[%s3427_s2 + $0x324] ss:$8 sps:$4 sm:$0xff]   ;;  %1306 = vmatprep.mubr.bf16.mxu1 %v2339_v63  ;;  %v2318_v2 = vld [vmem:[%s3427_s2 + $0xc0] ss:$8 sps:$4 sm:$0xff]  }
  0x25   :  { %1371 = vmatpush1.bf16.msra.mxu0 %v2210_v12  ;;  %v2319_v3 = vld [vmem:[%s3427_s2 + $0xd4] ss:$8 sps:$4 sm:$0xff]   ;;  %v2261_v5 = vld [vmem:[%s3427_s2 + $0x320] ss:$8 sps:$4 sm:$0xff]   ;;  %v2324_v7 = vld [vmem:[%s3427_s2 + $0xd0] ss:$8 sps:$4 sm:$0xff]  }
  0x26   :  { %1372 = vmatprep.subr.bf16.mxu0 %v2211_v13  ;;  %1283 = vmatpush1.bf16.msra.mxu1 %v2270_v32  ;;  %v2351_v4 = vld [vmem:[%s3426_s1 + $0x1c] ss:$48 sps:$4 sm:$0xff]   ;;  %v2267_v9 = vld [vmem:[%s3427_s2 + $0x330] ss:$8 sps:$4 sm:$0xff]   ;;  %v2330_v11 = vld [vmem:[%s3427_s2 + $0xe0] ss:$8 sps:$4 sm:$0xff]  }
  0x27   :  { %1284 = vmatprep.subr.bf16.mxu1 %v2271_v33  ;;  %v2269_v6 = vld [vmem:[%s3427_s2 + $0x334] ss:$8 sps:$4 sm:$0xff]   ;;  %v2325_v8 = vld [vmem:[%s3427_s2 + $0xe4] ss:$8 sps:$4 sm:$0xff]   ;;  %v2273_v13 = vld [vmem:[%s3427_s2 + $0x340] ss:$8 sps:$4 sm:$0xff]  }
  0x28   :  { %v2275_v10 = vld [vmem:[%s3427_s2 + $0x344] ss:$8 sps:$4 sm:$0xff]   ;;  %v2331_v12 = vld [vmem:[%s3427_s2 + $0xf4] ss:$8 sps:$4 sm:$0xff]   ;;  %v2279_v17 = vld [vmem:[%s3427_s2 + $0x350] ss:$8 sps:$4 sm:$0xff]  }
  0x29   :  { %1373 = vmatpush1.bf16.msra.mxu0 %v2213_v15  ;;  %v2281_v14 = vld [vmem:[%s3427_s2 + $0x354] ss:$8 sps:$4 sm:$0xff]   ;;  %v2336_v15 = vld [vmem:[%s3427_s2 + $0xf0] ss:$8 sps:$4 sm:$0xff]   ;;  %v2342_v16 = vld [vmem:[%s3427_s2 + $0x104] ss:$8 sps:$4 sm:$0xff]  }
  0x2a   :  { %1374 = vmatprep.subr.bf16.mxu0 %v2214_v18  ;;  %1285 = vmatpush1.bf16.msra.mxu1 %v2276_v36  ;;  %v2287_v18 = vld [vmem:[%s3427_s2 + $0x364] ss:$8 sps:$4 sm:$0xff]   ;;  %v2337_v19 = vld [vmem:[%s3426_s1] ss:$48 sps:$4 sm:$0xff]   ;;  %v2348_v21 = vld [vmem:[%s3427_s2 + $0x114] ss:$8 sps:$4 sm:$0xff]  }
  0x2b   :  { %1286 = vmatprep.subr.bf16.mxu1 %v2277_v37  ;;  %v2285_v22 = vld [vmem:[%s3427_s2 + $0x360] ss:$8 sps:$4 sm:$0xff]   ;;  %v2346_v24 = vld [vmem:[%s3427_s2 + $0x110] ss:$8 sps:$4 sm:$0xff]   ;;  %v2357_v25 = vld [vmem:[%s3427_s2 + $0x124] ss:$8 sps:$4 sm:$0xff]  }
  0x2c   :  { %v2355_v28 = vld [vmem:[%s3427_s2 + $0x120] ss:$8 sps:$4 sm:$0xff]   ;;  %v2363_v29 = vld [vmem:[%s3427_s2 + $0x134] ss:$8 sps:$4 sm:$0xff]   ;;  %v2361_v32 = vld [vmem:[%s3427_s2 + $0x130] ss:$8 sps:$4 sm:$0xff]  }
  0x2d   :  { %1375 = vmatpush1.bf16.msra.mxu0 %v2216_v20  ;;  %v2340_v20 = vld [vmem:[%s3427_s2 + $0x100] ss:$8 sps:$4 sm:$0xff]   ;;  %v2369_v33 = vld [vmem:[%s3427_s2 + $0x144] ss:$8 sps:$4 sm:$0xff]   ;;  %v2375_v37 = vld [vmem:[%s3427_s2 + $0x154] ss:$8 sps:$4 sm:$0xff]  }
  0x2e   :  { %1376 = vmatprep.subr.bf16.mxu0 %v2217_v23  ;;  %1287 = vmatpush1.bf16.msra.mxu1 %v2282_v40  ;;  %v2293_v23 = vld [vmem:[%s3427_s2 + $0x374] ss:$8 sps:$4 sm:$0xff]   ;;  %v2367_v36 = vld [vmem:[%s3427_s2 + $0x140] ss:$8 sps:$4 sm:$0xff]   ;;  %v2373_v40 = vld [vmem:[%s3427_s2 + $0x150] ss:$8 sps:$4 sm:$0xff]  }
  0x2f   :  { %1288 = vmatprep.subr.bf16.mxu1 %v2283_v41  ;;  %v2381_v41 = vld [vmem:[%s3427_s2 + $0x164] ss:$8 sps:$4 sm:$0xff]   ;;  %v2349_v63 = vld [vmem:[%s3426_s1 + $0x18] ss:$48 sps:$4 sm:$0xff]  }
  0x31   :  { %1377 = vmatpush1.bf16.msra.mxu0 %v2219_v26  ;;  %v2291_v26 = vld [vmem:[%s3427_s2 + $0x370] ss:$8 sps:$4 sm:$0xff]  }
  0x32   :  { %1378 = vmatprep.subr.bf16.mxu0 %v2220_v27  ;;  %1289 = vmatpush1.bf16.msra.mxu1 %v2288_v44  ;;  %v2299_v27 = vld [vmem:[%s3427_s2 + $0x384] ss:$8 sps:$4 sm:$0xff]   ;;  %v2379_v44 = vld [vmem:[%s3427_s2 + $0x160] ss:$8 sps:$4 sm:$0xff]  }
  0x33   :  { %1290 = vmatprep.subr.bf16.mxu1 %v2289_v45  ;;  %v2387_v45 = vld [vmem:[%s3427_s2 + $0x174] ss:$8 sps:$4 sm:$0xff]  }
  0x35   :  { %1379 = vmatpush1.bf16.msra.mxu0 %v2222_v30  ;;  %v2297_v30 = vld [vmem:[%s3427_s2 + $0x380] ss:$8 sps:$4 sm:$0xff]  }
  0x36   :  { %1380 = vmatprep.subr.bf16.mxu0 %v2223_v31  ;;  %1291 = vmatpush1.bf16.msra.mxu1 %v2294_v48  ;;  %v2305_v31 = vld [vmem:[%s3427_s2 + $0x394] ss:$8 sps:$4 sm:$0xff]  }
  0x37   :  { %1292 = vmatprep.subr.bf16.mxu1 %v2295_v49  ;;  %v2329_v48 = vld [vmem:[%s3427_s2 + $0x3d4] ss:$8 sps:$4 sm:$0xff]   ;;  %v2385_v49 = vld [vmem:[%s3427_s2 + $0x170] ss:$8 sps:$4 sm:$0xff]  }
  0x39   :  { %1381 = vmatpush1.bf16.msra.mxu0 %v2225_v34  ;;  %v2303_v34 = vld [vmem:[%s3427_s2 + $0x390] ss:$8 sps:$4 sm:$0xff]  }
  0x3a   :  { %1382 = vmatprep.subr.bf16.mxu0 %v2226_v35  ;;  %1293 = vmatpush1.bf16.msra.mxu1 %v2300_v52  ;;  %v2311_v35 = vld [vmem:[%s3427_s2 + $0x3a4] ss:$8 sps:$4 sm:$0xff]  }
  0x3b   :  { %1294 = vmatprep.subr.bf16.mxu1 %v2301_v53  ;;  %v2335_v52 = vld [vmem:[%s3427_s2 + $0x3e4] ss:$8 sps:$4 sm:$0xff]   ;;  %v2391_v53 = vld [vmem:[%s3427_s2 + $0x180] ss:$8 sps:$4 sm:$0xff]  }
  0x3d   :  { %1383 = vmatpush1.bf16.msra.mxu0 %v2228_v38  ;;  %v2309_v38 = vld [vmem:[%s3427_s2 + $0x3a0] ss:$8 sps:$4 sm:$0xff]  }
  0x3e   :  { %1384 = vmatprep.subr.bf16.mxu0 %v2229_v39  ;;  %1295 = vmatpush1.bf16.msra.mxu1 %v2306_v56  ;;  %v2317_v39 = vld [vmem:[%s3427_s2 + $0x3b4] ss:$8 sps:$4 sm:$0xff]  }
  0x3f   :  { %1296 = vmatprep.subr.bf16.mxu1 %v2307_v57  ;;  %v2345_v56 = vld [vmem:[%s3427_s2 + $0x3f4] ss:$8 sps:$4 sm:$0xff]   ;;  %v2397_v57 = vld [vmem:[%s3427_s2 + $0x190] ss:$8 sps:$4 sm:$0xff]  }
  0x41   :  { %1385 = vmatpush1.bf16.msra.mxu0 %v2231_v42  ;;  %v2315_v42 = vld [vmem:[%s3427_s2 + $0x3b0] ss:$8 sps:$4 sm:$0xff]  }
  0x42   :  { %1386 = vmatprep.subr.bf16.mxu0 %v2232_v43  ;;  %1297 = vmatpush1.bf16.msra.mxu1 %v2312_v61  ;;  %v2323_v43 = vld [vmem:[%s3427_s2 + $0x3c4] ss:$8 sps:$4 sm:$0xff]   ;;  %v2403_v61 = vld [vmem:[%s3427_s2 + $0x1a0] ss:$8 sps:$4 sm:$0xff]  }
  0x43   :  { %1298 = vmatprep.subr.bf16.mxu1 %v2313_v62  ;;  %v2411_v62 = vld [vmem:[%s3427_s2 + $0x1b4] ss:$8 sps:$4 sm:$0xff]  }
  0x45   :  { %1387 = vmatpush1.bf16.msra.mxu0 %v2234_v46  ;;  %v2441_v46 = vld [vmem:[%s3426_s1 + $0xc] ss:$48 sps:$4 sm:$0xff]  }
  0x46   :  { %1388 = vmatprep.subr.bf16.mxu0 %v2235_v47  ;;  %1299 = vmatpush1.bf16.msra.mxu1 %v2318_v2  ;;  %v2321_v47 = vld [vmem:[%s3427_s2 + $0x3c0] ss:$8 sps:$4 sm:$0xff]   ;;  %v2447_v2 = vld [vmem:[%s3426_s1 + $0x24] ss:$48 sps:$4 sm:$0xff]  }
  0x47   :  { %1300 = vmatprep.subr.bf16.mxu1 %v2319_v3  ;;  %v2409_v3 = vld [vmem:[%s3427_s2 + $0x1b0] ss:$8 sps:$4 sm:$0xff]  }
  0x49   :  { %1389 = vmatpush1.bf16.msra.mxu0 %v2237_v50  ;;  %v2393_v50 = vld [vmem:[%s3427_s2 + $0x184] ss:$8 sps:$4 sm:$0xff]  }
  0x4a   :  { %1390 = vmatprep.subr.bf16.mxu0 %v2240_v51  ;;  %1301 = vmatpush1.bf16.msra.mxu1 %v2324_v7  ;;  %v2327_v51 = vld [vmem:[%s3427_s2 + $0x3d0] ss:$8 sps:$4 sm:$0xff]   ;;  %v2415_v7 = vld [vmem:[%s3427_s2 + $0x1c0] ss:$8 sps:$4 sm:$0xff]  }
  0x4b   :  { %1302 = vmatprep.subr.bf16.mxu1 %v2325_v8  ;;  %v2423_v8 = vld [vmem:[%s3427_s2 + $0x1d4] ss:$8 sps:$4 sm:$0xff]  }
  0x4d   :  { %1391 = vmatpush1.bf16.msra.mxu0 %v2243_v54  ;;  %v2399_v54 = vld [vmem:[%s3427_s2 + $0x194] ss:$8 sps:$4 sm:$0xff]  }
  0x4e   :  { %1403 = vmatprep.subr.bf16.mxu0 %v2251_v55  ;;  %1303 = vmatpush1.bf16.msra.mxu1 %v2330_v11  ;;  %v2333_v55 = vld [vmem:[%s3427_s2 + $0x3e0] ss:$8 sps:$4 sm:$0xff]   ;;  %v2421_v11 = vld [vmem:[%s3427_s2 + $0x1d0] ss:$8 sps:$4 sm:$0xff]  }
  0x4f   :  { %1304 = vmatprep.subr.bf16.mxu1 %v2331_v12  ;;  %v2429_v12 = vld [vmem:[%s3427_s2 + $0x1e4] ss:$8 sps:$4 sm:$0xff]  }
  0x50   :  { %1393 = vmatmul.mubr.bf16.vlgmr.msra.gmra.mrb[0].mxu0 %v2246_v58  ;;  %v2405_v58 = vld [vmem:[%s3427_s2 + $0x1a4] ss:$8 sps:$4 sm:$0xff]  }
  0x51   :  { %1404 = vmatpush1.bf16.msra.mxu0 %v2249_v59  ;;  %1435 = vmatprep.mubr.bf16.mxu0 %v2351_v4  ;;  %v2343_v59 = vld [vmem:[%s3427_s2 + $0x3f0] ss:$8 sps:$4 sm:$0xff]   ;;  %v2417_v4 = vld [vmem:[%s3427_s2 + $0x1c4] ss:$8 sps:$4 sm:$0xff]  }
  0x52   :  { %1405 = vmatprep.subr.bf16.mxu0 %v2257_v60  ;;  %1305 = vmatpush1.bf16.msra.mxu1 %v2336_v15  ;;  %v2354_v60 = vld [vmem:[%s3427_s2 + $0x404] ss:$8 sps:$4 sm:$0xff]   ;;  %v2427_v15 = vld [vmem:[%s3427_s2 + $0x1e0] ss:$8 sps:$4 sm:$0xff]  }
  0x53   :  { %1317 = vmatprep.subr.bf16.mxu1 %v2342_v16  ;;  %v2435_v16 = vld [vmem:[%s3427_s2 + $0x1f4] ss:$8 sps:$4 sm:$0xff]  }
  0x55   :  { %1406 = vmatpush1.bf16.msra.mxu0 %v2255_v0  ;;  %1307 = vmatmul.mubr.bf16.vlgmr.msra.gmra.mrb[0].mxu1 %v2337_v19  ;;  %v2352_v0 = vld [vmem:[%s3427_s2 + $0x400] ss:$8 sps:$4 sm:$0xff]   ;;  %v2433_v19 = vld [vmem:[%s3427_s2 + $0x1f0] ss:$8 sps:$4 sm:$0xff]  }
  0x56   :  { %1407 = vmatprep.subr.bf16.mxu0 %v2263_v1  ;;  %1318 = vmatpush1.bf16.msra.mxu1 %v2340_v20  ;;  %v2360_v1 = vld [vmem:[%s3427_s2 + $0x414] ss:$8 sps:$4 sm:$0xff]   ;;  %v2382_v20 = vld [vmem:[%s3427_s2 + $0x450] ss:$8 sps:$4 sm:$0xff]  }
  0x57   :  { %1319 = vmatprep.subr.bf16.mxu1 %v2348_v21  ;;  %1349 = vmatprep.mubr.bf16.mxu1 %v2441_v46  ;;  %v2439_v21 = vld [vmem:[%s3426_s1 + $0x8] ss:$48 sps:$4 sm:$0xff]  }
  0x59   :  { %1408 = vmatpush1.bf16.msra.mxu0 %v2261_v5  ;;  %v2358_v5 = vld [vmem:[%s3427_s2 + $0x410] ss:$8 sps:$4 sm:$0xff]  }
  0x5a   :  { %1409 = vmatprep.subr.bf16.mxu0 %v2269_v6  ;;  %1320 = vmatpush1.bf16.msra.mxu1 %v2346_v24  ;;  %v2366_v6 = vld [vmem:[%s3427_s2 + $0x424] ss:$8 sps:$4 sm:$0xff]  }
  0x5b   :  { %1321 = vmatprep.subr.bf16.mxu1 %v2357_v25 }
  0x5d   :  { %1410 = vmatpush1.bf16.msra.mxu0 %v2267_v9  ;;  %v2364_v9 = vld [vmem:[%s3427_s2 + $0x420] ss:$8 sps:$4 sm:$0xff]  }
  0x5e   :  { %1411 = vmatprep.subr.bf16.mxu0 %v2275_v10  ;;  %1322 = vmatpush1.bf16.msra.mxu1 %v2355_v28  ;;  %v2372_v10 = vld [vmem:[%s3427_s2 + $0x434] ss:$8 sps:$4 sm:$0xff]  }
  0x5f   :  { %1323 = vmatprep.subr.bf16.mxu1 %v2363_v29 }
  0x61   :  { %1412 = vmatpush1.bf16.msra.mxu0 %v2273_v13  ;;  %v2370_v13 = vld [vmem:[%s3427_s2 + $0x430] ss:$8 sps:$4 sm:$0xff]  }
  0x62   :  { %1413 = vmatprep.subr.bf16.mxu0 %v2281_v14  ;;  %1324 = vmatpush1.bf16.msra.mxu1 %v2361_v32  ;;  %v2378_v14 = vld [vmem:[%s3427_s2 + $0x444] ss:$8 sps:$4 sm:$0xff]  }
  0x63   :  { %1325 = vmatprep.subr.bf16.mxu1 %v2369_v33 }
  0x65   :  { %1414 = vmatpush1.bf16.msra.mxu0 %v2279_v17  ;;  %v2376_v17 = vld [vmem:[%s3427_s2 + $0x440] ss:$8 sps:$4 sm:$0xff]  }
  0x66   :  { %1415 = vmatprep.subr.bf16.mxu0 %v2287_v18  ;;  %1326 = vmatpush1.bf16.msra.mxu1 %v2367_v36  ;;  %v2384_v18 = vld [vmem:[%s3427_s2 + $0x454] ss:$8 sps:$4 sm:$0xff]  }
  0x67   :  { %1327 = vmatprep.subr.bf16.mxu1 %v2375_v37 }
  0x69   :  { %1416 = vmatpush1.bf16.msra.mxu0 %v2285_v22 }
  0x6a   :  { %1417 = vmatprep.subr.bf16.mxu0 %v2293_v23  ;;  %1328 = vmatpush1.bf16.msra.mxu1 %v2373_v40 }
  0x6b   :  { %1329 = vmatprep.subr.bf16.mxu1 %v2381_v41 }
  0x6d   :  { %1418 = vmatpush1.bf16.msra.mxu0 %v2291_v26 }
  0x6e   :  { %1419 = vmatprep.subr.bf16.mxu0 %v2299_v27  ;;  %1330 = vmatpush1.bf16.msra.mxu1 %v2379_v44 }
  0x6f   :  { %1331 = vmatprep.subr.bf16.mxu1 %v2387_v45 }
  0x71   :  { %1420 = vmatpush1.bf16.msra.mxu0 %v2297_v30 }
  0x72   :  { %1421 = vmatprep.subr.bf16.mxu0 %v2305_v31  ;;  %1332 = vmatpush1.bf16.msra.mxu1 %v2385_v49 }
  0x73   :  { %1333 = vmatprep.subr.bf16.mxu1 %v2393_v50 }
  0x75   :  { %1422 = vmatpush1.bf16.msra.mxu0 %v2303_v34 }
  0x76   :  { %1423 = vmatprep.subr.bf16.mxu0 %v2311_v35  ;;  %1334 = vmatpush1.bf16.msra.mxu1 %v2391_v53 }
  0x77   :  { %1335 = vmatprep.subr.bf16.mxu1 %v2399_v54 }
  0x79   :  { %1424 = vmatpush1.bf16.msra.mxu0 %v2309_v38 }
  0x7a   :  { %1425 = vmatprep.subr.bf16.mxu0 %v2317_v39  ;;  %1336 = vmatpush1.bf16.msra.mxu1 %v2397_v57 }
  0x7b   :  { %1337 = vmatprep.subr.bf16.mxu1 %v2405_v58 }
  0x7d   :  { %1426 = vmatpush1.bf16.msra.mxu0 %v2315_v42 }
  0x7e   :  { %1427 = vmatprep.subr.bf16.mxu0 %v2323_v43  ;;  %1338 = vmatpush1.bf16.msra.mxu1 %v2403_v61 }
  0x7f   :  { %1339 = vmatprep.subr.bf16.mxu1 %v2411_v62 }
  0x81   :  { %1428 = vmatpush1.bf16.msra.mxu0 %v2321_v47 }
  0x82   :  { %1429 = vmatprep.subr.bf16.mxu0 %v2329_v48  ;;  %1340 = vmatpush1.bf16.msra.mxu1 %v2409_v3 }
  0x83   :  { %1341 = vmatprep.subr.bf16.mxu1 %v2417_v4 }
  0x85   :  { %1430 = vmatpush1.bf16.msra.mxu0 %v2327_v51 }
  0x86   :  { %1431 = vmatprep.subr.bf16.mxu0 %v2335_v52  ;;  %1342 = vmatpush1.bf16.msra.mxu1 %v2415_v7 }
  0x87   :  { %1343 = vmatprep.subr.bf16.mxu1 %v2423_v8 }
  0x89   :  { %1432 = vmatpush1.bf16.msra.mxu0 %v2333_v55 }
  0x8a   :  { %1433 = vmatprep.subr.bf16.mxu0 %v2345_v56  ;;  %1344 = vmatpush1.bf16.msra.mxu1 %v2421_v11 }
  0x8b   :  { %1345 = vmatprep.subr.bf16.mxu1 %v2429_v12 }
  0x8d   :  { %1434 = vmatpush1.bf16.msra.mxu0 %v2343_v59 }
  0x8e   :  { %1446 = vmatprep.subr.bf16.mxu0 %v2354_v60  ;;  %1346 = vmatpush1.bf16.msra.mxu1 %v2427_v15 }
  0x8f   :  { %1347 = vmatprep.subr.bf16.mxu1 %v2435_v16 }
  0x90   :  { %1436 = vmatmul.mubr.bf16.vlgmr.msra.gmra.mrb[0].mxu0 %v2349_v63 }
  0x91   :  { %1447 = vmatpush1.bf16.msra.mxu0 %v2352_v0  ;;  %1478 = vmatprep.mubr.bf16.mxu0 %v2447_v2 }
  0x92   :  { %1448 = vmatprep.subr.bf16.mxu0 %v2360_v1 }
  0x95   :  { %1449 = vmatpush1.bf16.msra.mxu0 %v2358_v5 }
  0x96   :  { %1450 = vmatprep.subr.bf16.mxu0 %v2366_v6 }
  0x99   :  { %1451 = vmatpush1.bf16.msra.mxu0 %v2364_v9 }
  0x9a   :  { %1452 = vmatprep.subr.bf16.mxu0 %v2372_v10 }
  0x9d   :  { %1453 = vmatpush1.bf16.msra.mxu0 %v2370_v13 }
  0x9e   :  { %1454 = vmatprep.subr.bf16.mxu0 %v2378_v14 }
  0xa1   :  { %1455 = vmatpush1.bf16.msra.mxu0 %v2376_v17 }
  0xa2   :  { %23 = vsyncpa [#allocation6], 0  ;;  %1456 = vmatprep.subr.bf16.mxu0 %v2384_v18  ;;  %v2390_v22 = vld [vmem:[%s3427_s2 + $0x464] ss:$8 sps:$4 sm:$0xff]   ;;  %1348 = vmatpush1.bf16.msra.mxu1 %v2433_v19  ;;  %v2388_v23 = vld [vmem:[%s3427_s2 + $0x460] ss:$8 sps:$4 sm:$0xff]  }
  0xa3   :  { %v2396_v24 = vld [vmem:[%s3427_s2 + $0x474] ss:$8 sps:$4 sm:$0xff]   ;;  %v2394_v25 = vld [vmem:[%s3427_s2 + $0x470] ss:$8 sps:$4 sm:$0xff]   ;;  %v2402_v26 = vld [vmem:[%s3427_s2 + $0x484] ss:$8 sps:$4 sm:$0xff]  }
  0xa4   :  { %v2400_v27 = vld [vmem:[%s3427_s2 + $0x480] ss:$8 sps:$4 sm:$0xff]   ;;  %v2408_v28 = vld [vmem:[%s3427_s2 + $0x494] ss:$8 sps:$4 sm:$0xff]   ;;  %v2406_v29 = vld [vmem:[%s3427_s2 + $0x490] ss:$8 sps:$4 sm:$0xff]  }
  0xa5   :  { %1457 = vmatpush1.bf16.msra.mxu0 %v2382_v20  ;;  %1350 = vmatmul.mubr.bf16.vlgmr.msra.gmra.mrb[0].mxu1 %v2439_v21  ;;  %v2414_v30 = vld [vmem:[%s3427_s2 + $0x4a4] ss:$8 sps:$4 sm:$0xff]   ;;  %v2412_v31 = vld [vmem:[%s3427_s2 + $0x4a0] ss:$8 sps:$4 sm:$0xff]   ;;  %v2420_v32 = vld [vmem:[%s3427_s2 + $0x4b4] ss:$8 sps:$4 sm:$0xff]  }
  0xa6   :  { %1458 = vmatprep.subr.bf16.mxu0 %v2390_v22  ;;  %v2418_v33 = vld [vmem:[%s3427_s2 + $0x4b0] ss:$8 sps:$4 sm:$0xff]   ;;  %v2426_v34 = vld [vmem:[%s3427_s2 + $0x4c4] ss:$8 sps:$4 sm:$0xff]   ;;  %v2424_v35 = vld [vmem:[%s3427_s2 + $0x4c0] ss:$8 sps:$4 sm:$0xff]  }
  0xa7   :  { %v2432_v36 = vld [vmem:[%s3427_s2 + $0x4d4] ss:$8 sps:$4 sm:$0xff]   ;;  %v2430_v37 = vld [vmem:[%s3427_s2 + $0x4d0] ss:$8 sps:$4 sm:$0xff]   ;;  %v2438_v38 = vld [vmem:[%s3427_s2 + $0x4e4] ss:$8 sps:$4 sm:$0xff]  }
  0xa8   :  { %v2436_v39 = vld [vmem:[%s3427_s2 + $0x4e0] ss:$8 sps:$4 sm:$0xff]   ;;  %v2444_v40 = vld [vmem:[%s3427_s2 + $0x4f4] ss:$8 sps:$4 sm:$0xff]   ;;  %v2442_v41 = vld [vmem:[%s3427_s2 + $0x4f0] ss:$8 sps:$4 sm:$0xff]  }
  0xa9   :  { %1459 = vmatpush1.bf16.msra.mxu0 %v2388_v23  ;;  %v2450_v42 = vld [vmem:[%s3427_s2 + $0x504] ss:$8 sps:$4 sm:$0xff]   ;;  %v2445_v43 = vld [vmem:[%s3426_s1 + $0x20] ss:$48 sps:$4 sm:$0xff]   ;;  %v2453_v46 = vld [vmem:[%s3427_s2 + $0x514] ss:$8 sps:$4 sm:$0xff]  }
  0xaa   :  { %1460 = vmatprep.subr.bf16.mxu0 %v2396_v24  ;;  %v2448_v44 = vld [vmem:[%s3427_s2 + $0x500] ss:$8 sps:$4 sm:$0xff]   ;;  %v2498_v45 = vld [vmem:[%s3426_s1 + $0x2c] ss:$48 sps:$4 sm:$0xff]   ;;  %v2451_v47 = vld [vmem:[%s3427_s2 + $0x510] ss:$8 sps:$4 sm:$0xff]  }
  0xab   :  { %v2456_v48 = vld [vmem:[%s3427_s2 + $0x524] ss:$8 sps:$4 sm:$0xff]   ;;  %v2454_v49 = vld [vmem:[%s3427_s2 + $0x520] ss:$8 sps:$4 sm:$0xff]   ;;  %v2459_v50 = vld [vmem:[%s3427_s2 + $0x534] ss:$8 sps:$4 sm:$0xff]  }
  0xac   :  { %v2457_v51 = vld [vmem:[%s3427_s2 + $0x530] ss:$8 sps:$4 sm:$0xff]   ;;  %v2462_v52 = vld [vmem:[%s3427_s2 + $0x544] ss:$8 sps:$4 sm:$0xff]   ;;  %v2460_v53 = vld [vmem:[%s3427_s2 + $0x540] ss:$8 sps:$4 sm:$0xff]  }
  0xad   :  { %1461 = vmatpush1.bf16.msra.mxu0 %v2394_v25  ;;  %v2465_v54 = vld [vmem:[%s3427_s2 + $0x554] ss:$8 sps:$4 sm:$0xff]   ;;  %v2463_v55 = vld [vmem:[%s3427_s2 + $0x550] ss:$8 sps:$4 sm:$0xff]   ;;  %v2468_v56 = vld [vmem:[%s3427_s2 + $0x564] ss:$8 sps:$4 sm:$0xff]  }
  0xae   :  { %1462 = vmatprep.subr.bf16.mxu0 %v2402_v26  ;;  %v2466_v57 = vld [vmem:[%s3427_s2 + $0x560] ss:$8 sps:$4 sm:$0xff]   ;;  %v2471_v58 = vld [vmem:[%s3427_s2 + $0x574] ss:$8 sps:$4 sm:$0xff]   ;;  %v2469_v59 = vld [vmem:[%s3427_s2 + $0x570] ss:$8 sps:$4 sm:$0xff]  }
  0xaf   :  { %v2474_v60 = vld [vmem:[%s3427_s2 + $0x584] ss:$8 sps:$4 sm:$0xff]   ;;  %v2472_v61 = vld [vmem:[%s3427_s2 + $0x580] ss:$8 sps:$4 sm:$0xff]   ;;  %v2477_v62 = vld [vmem:[%s3427_s2 + $0x594] ss:$8 sps:$4 sm:$0xff]  }
  0xb0   :  { %v2475_v63 = vld [vmem:[%s3427_s2 + $0x590] ss:$8 sps:$4 sm:$0xff]   ;;  %v2480_v0 = vld [vmem:[%s3427_s2 + $0x5a4] ss:$8 sps:$4 sm:$0xff]   ;;  %v2478_v1 = vld [vmem:[%s3427_s2 + $0x5a0] ss:$8 sps:$4 sm:$0xff]  }
  0xb1   :  { %1463 = vmatpush1.bf16.msra.mxu0 %v2400_v27  ;;  %v2483_v2 = vld [vmem:[%s3427_s2 + $0x5b4] ss:$8 sps:$4 sm:$0xff]   ;;  %v2481_v3 = vld [vmem:[%s3427_s2 + $0x5b0] ss:$8 sps:$4 sm:$0xff]   ;;  %v2486_v4 = vld [vmem:[%s3427_s2 + $0x5c4] ss:$8 sps:$4 sm:$0xff]  }
  0xb2   :  { %1464 = vmatprep.subr.bf16.mxu0 %v2408_v28  ;;  %v2499_v5 = vld [vmem:[%s3429_s4] ss:$8 sps:$4 sm:$0xff]   ;;  %v2501_v6 = vld [vmem:[%s3429_s4 + $0x4] ss:$8 sps:$4 sm:$0xff]   ;;  %v2504_v8 = vld [vmem:[%s3429_s4 + $0x14] ss:$8 sps:$4 sm:$0xff]  }
  0xb3   :  { %v2484_v7 = vld [vmem:[%s3427_s2 + $0x5c0] ss:$8 sps:$4 sm:$0xff]   ;;  %v2489_v9 = vld [vmem:[%s3427_s2 + $0x5d4] ss:$8 sps:$4 sm:$0xff]   ;;  %1742 = vmatprep.subr.bf16.mxu1 %v2501_v6  ;;  %v2502_v10 = vld [vmem:[%s3429_s4 + $0x10] ss:$8 sps:$4 sm:$0xff]  }
  0xb4   :  { %1743 = vmatpush1.bf16.msra.mxu1 %v2499_v5  ;;  %v2507_v11 = vld [vmem:[%s3429_s4 + $0x24] ss:$8 sps:$4 sm:$0xff]   ;;  %v2487_v12 = vld [vmem:[%s3427_s2 + $0x5d0] ss:$8 sps:$4 sm:$0xff]   ;;  %v2505_v14 = vld [vmem:[%s3429_s4 + $0x20] ss:$8 sps:$4 sm:$0xff]  }
  0xb5   :  { %1465 = vmatpush1.bf16.msra.mxu0 %v2406_v29  ;;  %1744 = vmatprep.subr.bf16.mxu1 %v2504_v8  ;;  %v2492_v13 = vld [vmem:[%s3427_s2 + $0x5e4] ss:$8 sps:$4 sm:$0xff]   ;;  %v2510_v15 = vld [vmem:[%s3429_s4 + $0x34] ss:$8 sps:$4 sm:$0xff]   ;;  %v2490_v16 = vld [vmem:[%s3427_s2 + $0x5e0] ss:$8 sps:$4 sm:$0xff]  }
  0xb6   :  { %1466 = vmatprep.subr.bf16.mxu0 %v2414_v30  ;;  %v2495_v17 = vld [vmem:[%s3427_s2 + $0x5f4] ss:$8 sps:$4 sm:$0xff]   ;;  %v2508_v18 = vld [vmem:[%s3429_s4 + $0x30] ss:$8 sps:$4 sm:$0xff]   ;;  %v2513_v19 = vld [vmem:[%s3429_s4 + $0x44] ss:$8 sps:$4 sm:$0xff]  }
  0xb7   :  { %v2493_v20 = vld [vmem:[%s3427_s2 + $0x5f0] ss:$8 sps:$4 sm:$0xff]   ;;  %v2511_v21 = vld [vmem:[%s3429_s4 + $0x40] ss:$8 sps:$4 sm:$0xff]   ;;  %v2516_v23 = vld [vmem:[%s3429_s4 + $0x54] ss:$8 sps:$4 sm:$0xff]  }
  0xb8   :  { %1745 = vmatpush1.bf16.msra.mxu1 %v2502_v10  ;;  %v2496_v22 = vld [vmem:[%s3426_s1 + $0x28] ss:$48 sps:$4 sm:$0xff]   ;;  %v2519_v25 = vld [vmem:[%s3429_s4 + $0x64] ss:$8 sps:$4 sm:$0xff]   ;;  %v2522_v27 = vld [vmem:[%s3429_s4 + $0x74] ss:$8 sps:$4 sm:$0xff]  }
  0xb9   :  { %1467 = vmatpush1.bf16.msra.mxu0 %v2412_v31  ;;  %1746 = vmatprep.subr.bf16.mxu1 %v2507_v11  ;;  %v2514_v24 = vld [vmem:[%s3429_s4 + $0x50] ss:$8 sps:$4 sm:$0xff]   ;;  %v2517_v26 = vld [vmem:[%s3429_s4 + $0x60] ss:$8 sps:$4 sm:$0xff]   ;;  %v2525_v29 = vld [vmem:[%s3429_s4 + $0x84] ss:$8 sps:$4 sm:$0xff]  }
  0xba   :  { %1468 = vmatprep.subr.bf16.mxu0 %v2420_v32  ;;  %v2520_v28 = vld [vmem:[%s3429_s4 + $0x70] ss:$8 sps:$4 sm:$0xff]   ;;  %v2523_v30 = vld [vmem:[%s3429_s4 + $0x80] ss:$8 sps:$4 sm:$0xff]   ;;  %v2528_v31 = vld [vmem:[%s3429_s4 + $0x94] ss:$8 sps:$4 sm:$0xff]  }
  0xbb   :  { %v2526_v32 = vld [vmem:[%s3429_s4 + $0x90] ss:$8 sps:$4 sm:$0xff]   ;;  %v2162_v10 = vld [vmem:[#allocation4] ss:$0 sm:$0xff]  ;;  %v2608_v11 = vmov 0   ;;  %vm1835_vm0 = vcmask 1041409  }
  0xbc   :  { %1747 = vmatpush1.bf16.msra.mxu1 %v2505_v14  ;;  %2191 = vset.pattern.permute.xlu1 %v2608_v11  ;;  %vm1838_vm1 = vcmask 58368   ;;  %s2609_s26 = smov [#allocation5]  }
  0xbd   :  { %1469 = vmatpush1.bf16.msra.mxu0 %v2418_v33  ;;  %1748 = vmatprep.subr.bf16.mxu1 %v2510_v15  ;;  %v2531_v33 = vld [vmem:[%s3429_s4 + $0xa4] ss:$8 sps:$4 sm:$0xff]   ;;  %s1914_s27 = sshll.u32 %s2609_s26, 4  ;;  %s1915_s27 = int_to_ptr.vmem [resolvable:$true] %s1914_s27 }
  0xbe   :  { %1470 = vmatprep.subr.bf16.mxu0 %v2426_v34  ;;  %v2529_v34 = vld [vmem:[%s3429_s4 + $0xa0] ss:$8 sps:$4 sm:$0xff]   ;;  %2192 = vset.pattern.permute.xlu0 %v2608_v11  ;;  %s2581_s28 = scalar_lea.vmem %s1915_s27, 32  ;;  %p2586_p6 = scmp.lt.s32.totalorder %s1915_s27, %s1915_s27 }
  0xbf   :  { %1818 = vperm.xlu1 %2191, %v2162_v10   ;;  %p2582_p5 = scmp.ne.s32.totalorder %s1915_s27, %s2581_s28  ;;  %p2587_p7 = scmp.lt.s32.totalorder %s2581_s28, %s2581_s28 }
  0xc0   :  { %1749 = vmatpush1.bf16.msra.mxu1 %v2508_v18 }
  0xc1   :  { %1471 = vmatpush1.bf16.msra.mxu0 %v2424_v35  ;;  %1750 = vmatprep.subr.bf16.mxu1 %v2513_v19  ;;  %v2534_v35 = vld [vmem:[%s3429_s4 + $0xb4] ss:$8 sps:$4 sm:$0xff]   ;;  %p2588_p8 = por %p2587_p7, %p2586_p6 }
  0xc2   :  { %1472 = vmatprep.subr.bf16.mxu0 %v2432_v36  ;;  %v2532_v36 = vld [vmem:[%s3429_s4 + $0xb0] ss:$8 sps:$4 sm:$0xff]  }
  0xc3   :  { %p2589_p9 = pnand %p2588_p8, %p2582_p5 }
  0xc4   :  { %1751 = vmatpush1.bf16.msra.mxu1 %v2511_v21 }
  0xc5   :  { %1473 = vmatpush1.bf16.msra.mxu0 %v2430_v37  ;;  %1752 = vmatprep.subr.bf16.mxu1 %v2516_v23  ;;  %v2537_v37 = vld [vmem:[%s3429_s4 + $0xc4] ss:$8 sps:$4 sm:$0xff]   ;;  %v1789_v23 = vld [vmem:[%s3431_s6] sm:$0x3]  ;;  %s2163_s6 = sld [smem:[#allocation3 + $0x1]] }
  0xc6   :  { %1474 = vmatprep.subr.bf16.mxu0 %v2438_v38  ;;  %v2535_v38 = vld [vmem:[%s3429_s4 + $0xc0] ss:$8 sps:$4 sm:$0xff]  }
  0xc8   :  { %1753 = vmatpush1.bf16.msra.mxu1 %v2514_v24 }
  0xc9   :  { %1475 = vmatpush1.bf16.msra.mxu0 %v2436_v39  ;;  %1754 = vmatprep.subr.bf16.mxu1 %v2519_v25  ;;  %v2538_v39 = vld [vmem:[%s3429_s4 + $0xd0] ss:$8 sps:$4 sm:$0xff]  }
  0xca   :  { %1476 = vmatprep.subr.bf16.mxu0 %v2444_v40  ;;  %v2540_v40 = vld [vmem:[%s3429_s4 + $0xd4] ss:$8 sps:$4 sm:$0xff]  }
  0xcc   :  { %1755 = vmatpush1.bf16.msra.mxu1 %v2517_v26 }
  0xcd   :  { %1477 = vmatpush1.bf16.msra.mxu0 %v2442_v41  ;;  %1756 = vmatprep.subr.bf16.mxu1 %v2522_v27  ;;  %v2543_v41 = vld [vmem:[%s3429_s4 + $0xe4] ss:$8 sps:$4 sm:$0xff]  }
  0xce   :  { %1489 = vmatprep.subr.bf16.mxu0 %v2450_v42  ;;  %v2541_v42 = vld [vmem:[%s3429_s4 + $0xe0] ss:$8 sps:$4 sm:$0xff]  }
  0xd0   :  { %1479 = vmatmul.mubr.bf16.vlgmr.msra.gmra.mrb[0].mxu0 %v2445_v43  ;;  %1757 = vmatpush1.bf16.msra.mxu1 %v2520_v28  ;;  %v2546_v43 = vld [vmem:[%s3429_s4 + $0xf4] ss:$8 sps:$4 sm:$0xff]  }
  0xd1   :  { %1490 = vmatpush1.bf16.msra.mxu0 %v2448_v44  ;;  %1521 = vmatprep.mubr.bf16.mxu0 %v2498_v45  ;;  %v2544_v44 = vld [vmem:[%s3429_s4 + $0xf0] ss:$8 sps:$4 sm:$0xff]  }
  0xd2   :  { %1491 = vmatprep.subr.bf16.mxu0 %v2453_v46  ;;  %1758 = vmatprep.subr.bf16.mxu1 %v2525_v29 }
  0xd4   :  { %1759 = vmatpush1.bf16.msra.mxu1 %v2523_v30 }
  0xd5   :  { %1492 = vmatpush1.bf16.msra.mxu0 %v2451_v47  ;;  %1760 = vmatprep.subr.bf16.mxu1 %v2528_v31 }
  0xd6   :  { %1493 = vmatprep.subr.bf16.mxu0 %v2456_v48 }
  0xd8   :  { %1761 = vmatpush1.bf16.msra.mxu1 %v2526_v32 }
  0xd9   :  { %1494 = vmatpush1.bf16.msra.mxu0 %v2454_v49  ;;  %1762 = vmatprep.subr.bf16.mxu1 %v2531_v33  ;;  %v244_v49 = vlaneseq }
  0xda   :  { %1495 = vmatprep.subr.bf16.mxu0 %v2459_v50 }
  0xdb   :  { %v3375_v50 = vshrl.u32 %v244_v49, 7 }
  0xdc   :  { %1763 = vmatpush1.bf16.msra.mxu1 %v2529_v34 }
  0xdd   :  { %1496 = vmatpush1.bf16.msra.mxu0 %v2457_v51  ;;  %1764 = vmatprep.subr.bf16.mxu1 %v2534_v35  ;;  %v3378_v51 = vsub.s32 0, %v3375_v50  ;;  %vm1889_vm2 = vcmp.eq.s32.totalorder %v3375_v50, 0  ;;  %vm1896_vm3 = vcmp.eq.s32.totalorder %v3375_v50, 1 }
  0xde   :  { %1497 = vmatprep.subr.bf16.mxu0 %v2462_v52  ;;  %v242_v52 = vld [vmem:[%s3428_s3] sm:$0x3] }
  0xdf   :  { %v1794_v24 = vrot.slane %v1789_v23, %v3378_v51 }
  0xe0   :  { %1765 = vmatpush1.bf16.msra.mxu1 %v2532_v36  ;;  %v1826_v36 = vand.u32 127, %v244_v49 }
  0xe1   :  { %1498 = vmatpush1.bf16.msra.mxu0 %v2460_v53  ;;  %1766 = vmatprep.subr.bf16.mxu1 %v2537_v37  ;;  %v3384_v53 = vsub.s32 1, %v3375_v50 }
  0xe2   :  { %1499 = vmatprep.subr.bf16.mxu0 %v2465_v54  ;;  %v247_v54 = vrot.slane %v242_v52, %v3378_v51 }
  0xe3   :  { %v1798_v25 = vrot.slane %v1789_v23, %v3384_v53 }
  0xe4   :  { %1767 = vmatpush1.bf16.msra.mxu1 %v2535_v38 }
  0xe5   :  { %1500 = vmatpush1.bf16.msra.mxu0 %v2463_v55  ;;  %1768 = vmatprep.subr.bf16.mxu1 %v2540_v40  ;;  %v251_v55 = vrot.slane %v242_v52, %v3384_v53 }
  0xe6   :  { %1501 = vmatprep.subr.bf16.mxu0 %v2468_v56 }
  0xe8   :  { %1769 = vmatpush1.bf16.msra.mxu1 %v2538_v39  ;;  %v1829_v39 = vsub.s32 %v1826_v36, %v3375_v50 }
  0xe9   :  { %1502 = vmatpush1.bf16.msra.mxu0 %v2466_v57  ;;  %1770 = vmatprep.subr.bf16.mxu1 %v2543_v41 }
  0xea   :  { %1503 = vmatprep.subr.bf16.mxu0 %v2471_v58 }
  0xec   :  { %1771 = vmatpush1.bf16.msra.mxu1 %v2541_v42 }
  0xed   :  { %1504 = vmatpush1.bf16.msra.mxu0 %v2469_v59  ;;  %1772 = vmatprep.subr.bf16.mxu1 %v2546_v43 }
  0xee   :  { %1505 = vmatprep.subr.bf16.mxu0 %v2474_v60 }
  0xf0   :  { %1773 = vmatpush1.bf16.msra.mxu1 %v2544_v44 }
  0xf1   :  { %1506 = vmatpush1.bf16.msra.mxu0 %v2472_v61 }
  0xf2   :  { %1507 = vmatprep.subr.bf16.mxu0 %v2477_v62 }
  0xf5   :  { %1508 = vmatpush1.bf16.msra.mxu0 %v2475_v63 }
  0xf6   :  { %1509 = vmatprep.subr.bf16.mxu0 %v2480_v0 }
  0xf9   :  { %1510 = vmatpush1.bf16.msra.mxu0 %v2478_v1 }
  0xfa   :  { %1511 = vmatprep.subr.bf16.mxu0 %v2483_v2 }
  0xfd   :  { %1512 = vmatpush1.bf16.msra.mxu0 %v2481_v3 }
  0xfe   :  { %1513 = vmatprep.subr.bf16.mxu0 %v2486_v4 }
 0x101   :  { %1514 = vmatpush1.bf16.msra.mxu0 %v2484_v7 }
 0x102   :  { %1515 = vmatprep.subr.bf16.mxu0 %v2489_v9 }
 0x105   :  { %1516 = vmatpush1.bf16.msra.mxu0 %v2487_v12  ;;  %v1570_v12 = vld [vmem:[%s3430_s5] sm:$0x3]  ;;  %s1890_s5 = sld [smem:[#allocation3]] }
 0x106   :  { %1517 = vmatprep.subr.bf16.mxu0 %v2492_v13  ;;  %v1575_v13 = vrot.slane %v1570_v12, %v3378_v51  ;;  %v1579_v14 = vrot.slane %v1570_v12, %v3384_v53 }
 0x109   :  { %1518 = vmatpush1.bf16.msra.mxu0 %v2490_v16 }
 0x10a   :  { %1519 = vmatprep.subr.bf16.mxu0 %v2495_v17 }
 0x10d   :  { %1520 = vmatpush1.bf16.msra.mxu0 %v2493_v20 }
 0x110   :  { %1522 = vmatmul.mubr.bf16.vlgmr.msra.gmra.mrb[0].mxu0 %v2496_v22 }
 0x13e   :  { %v1819_v37 = vpop.permute.xlu1 %1818 }
 0x178   :  { %v1351_v45 = vpop.f32.mrb[0].mxu1 }
 0x179   :  { %v1353_v46 = vpop.f32.mrb[1].mxu1  ;;  %v2164_v56 = vadd.f32 %v1351_v45, %v247_v54 }
 0x17a   :  { %v1355_v47 = vpop.f32.mrb[2].mxu1  ;;  %v2166_v57 = vadd.f32 %v1353_v46, %v251_v55 }
 0x17b   :  { %v1357_v48 = vpop.f32.mrb[3].mxu1  ;;  %v2168_v59 = vadd.f32 %v1355_v47, %v247_v54 }
 0x17c   :  { %v2170_v62 = vadd.f32 %v1357_v48, %v251_v55 }
 0x1e3   :  { %v1523_v58 = vpop.f32.mrb[0].mxu0 }
 0x1e4   :  { %v2165_v60 = vadd.f32 %v2164_v56, %v1523_v58  ;;  %v1525_v61 = vpop.f32.mrb[1].mxu0 }
 0x1e5   :  { %v2167_v63 = vadd.f32 %v2166_v57, %v1525_v61  ;;  %v1527_v0 = vpop.f32.mrb[2].mxu0 }
 0x1e6   :  { %2547 = vtanh.f32 %v2165_v60  ;;  %v2169_v1 = vadd.f32 %v2168_v59, %v1527_v0  ;;  %v1529_v2 = vpop.f32.mrb[3].mxu0  ;;  %v1891_v59 = vstv %s1890_s5 }
 0x1e7   :  { %2549 = vtanh.f32 %v2167_v63  ;;  %v2171_v3 = vadd.f32 %v2170_v62, %v1529_v2  ;;  %v1892_v60 = vsel %vm1889_vm2, %v1891_v59, 0 }
 0x1e8   :  { %2551 = vtanh.f32 %v2169_v1 }
 0x1e9   :  { %2553 = vtanh.f32 %v2171_v3 }
 0x1f0   :  { %v2548_v4 = vpop.eup %2547 }
 0x1f1   :  { %v2550_v5 = vpop.eup %2549 }
 0x1f2   :  { %v2552_v6 = vpop.eup %2551 }
 0x1f3   :  { %v2554_v7 = vpop.eup %2553  ;;  %v1536_v8 = vpack.c.bf16 %v2552_v6, %v2548_v4 }
 0x1f4   :  { %v1537_v9 = vpack.c.bf16 %v2554_v7, %v2550_v5 }
 0x1f6   :  { %1774 = vmatprep.mubr.bf16.mxu1 %v1537_v9 }
 0x1f7   :  { %1775 = vmatmul.mubr.bf16.vlgmr.msra.gmra.mrb[4].mxu1 %v1536_v8 }
 0x2ca   :  { %v1776_v15 = vpop.f32.mrb[4].mxu1 }
 0x2cb   :  { %v1777_v16 = vadd.f32 %v1776_v15, %v1575_v13  ;;  %v1778_v17 = vpop.f32.mrb[5].mxu1 }
 0x2cc   :  { %v1779_v18 = vadd.f32 %v1778_v17, %v1579_v14  ;;  %v1780_v19 = vpop.f32.mrb[6].mxu1 }
 0x2cd   :  { %2555 = vtanh.f32 %v1777_v16  ;;  %v1781_v20 = vadd.f32 %v1780_v19, %v1575_v13  ;;  %v1782_v21 = vpop.f32.mrb[7].mxu1 }
 0x2ce   :  { %2557 = vtanh.f32 %v1779_v18  ;;  %v1783_v22 = vadd.f32 %v1782_v21, %v1579_v14 }
 0x2cf   :  { %2559 = vtanh.f32 %v1781_v20 }
 0x2d0   :  { %2561 = vtanh.f32 %v1783_v22 }
 0x2d7   :  { %v2556_v26 = vpop.eup %2555 }
 0x2d8   :  { %v2558_v27 = vpop.eup %2557  ;;  %v1801_v28 = vmul.f32 %v2556_v26, %v1794_v24 }
 0x2d9   :  { %v2560_v29 = vpop.eup %2559  ;;  %v1802_v30 = vmul.f32 %v2558_v27, %v1798_v25 }
 0x2da   :  { %v2562_v31 = vpop.eup %2561  ;;  %v1803_v32 = vmul.f32 %v2560_v29, %v1794_v24 }
 0x2db   :  { %v1805_v33 = vadd.f32 %v1802_v30, %v1801_v28  ;;  %v1804_v34 = vmul.f32 %v2562_v31, %v1798_v25 }
 0x2dd   :  { %1806 = vadd.xlane.f32.xlu0 %v1805_v33  ;;  %v1808_v35 = vadd.f32 %v1804_v34, %v1803_v32 }
 0x2e1   :  { %1809 = vadd.xlane.f32.xlu0 %v1808_v35 }
 0x36a   :  { %v1807_v38 = vpop.xlane.xlu0 %1806 }
 0x36b   :  { %v1821_v40 = vadd.f32 %v1819_v37, %v1807_v38 }
 0x36d   :  { %v1830_v43 = vrot.slane %v1821_v40, %v1829_v39 }
 0x36e   :  { %v1810_v41 = vpop.xlane.xlu0 %1809 }
 0x36f   :  { %v1822_v42 = vadd.f32 %v1819_v37, %v1810_v41 }
 0x371   :  { %v1834_v44 = vrot.slane %v1822_v42, %v1829_v39 }
 0x373   :  { %v1836_v45 = vsel %vm1835_vm0, %v1834_v44, %v1830_v43 }
 0x374   :  { %v1840_v46 = vsel %vm1838_vm1, %v1836_v45, -inf  ;;  %1839 = vst.msk [vmem:[#allocation5] sm:$0x3] %vm1838_vm1, %v1836_v45 }
 0x375   :  { %1841 = vmax.xlane.f32.xlu1 %v1840_v46 }
 0x402   :  { %v1842_v47 = vpop.xlane.xlu1 %1841 }
 0x403   :  { %v1847_v48 = vrot.slane %v1842_v47, %v3378_v51  ;;  %v1851_v49 = vrot.slane %v1842_v47, %v3384_v53  ;;  %v1898_v51 = vstv %s2163_s6 }
 0x404   :  { %v1899_v53 = vsel %vm1896_vm3, %v1898_v51, %v1892_v60 }
 0x405   :  { %v1854_v52 = vsub.f32 %v1821_v40, %v1847_v48  ;;  %v1855_v54 = vsub.f32 %v1822_v42, %v1851_v49  ;;  %vm1900_vm4 = vcmp.eq.s32.totalorder %v1826_v36, %v1899_v53 }
 0x406   :  { %v1901_v61 = vsel %vm1900_vm4, %v1836_v45, 0.0 }
 0x407   :  { %v1856_v55 = vmul.f32 1.442695, %v1854_v52  ;;  %v1858_v56 = vmul.f32 1.442695, %v1855_v54  ;;  %v1902_v62 = vsel %vm1838_vm1, %v1901_v61, 0.0 }
 0x409   :  { %2563 = vpow2.f32 %v1856_v55 }
 0x40a   :  { %2565 = vpow2.f32 %v1858_v56 }
 0x413   :  { %v2564_v57 = vpop.eup %2563 }
 0x414   :  { %v2566_v58 = vpop.eup %2565  ;;  %1863 = vperm.xlu0 %2192, %v2564_v57  }
 0x415   :  { %1866 = vperm.xlu1 %2191, %v2566_v58  }
 0x439   :  { %1903 = vadd.xlane.f32.xlu1 %v1902_v62 }
 0x493   :  { %v1864_v63 = vpop.permute.xlu0 %1863 }
 0x494   :  { %v1867_v0 = vpop.permute.xlu1 %1866  ;;  %v1871_v1 = vrot.slane %v1864_v63, %v1829_v39 }
 0x495   :  { %v1875_v2 = vrot.slane %v1867_v0, %v1829_v39 }
 0x497   :  { %v1876_v3 = vsel %vm1835_vm0, %v1875_v2, %v1871_v1 }
 0x498   :  { %v1878_v4 = vsel %vm1838_vm1, %v1876_v3, 0.0 }
 0x499   :  { %1879 = vadd.xlane.f32.xlu0 %v1878_v4 }
 0x49a   :  { %2592 = shalt.err (!%p2589_p9)
}
 0x49b   :  { %s2593_s10 = scalar_lea.hbm %s3432_s8, 32 }
 0x49c   :  { %p2594_p10 = scmp.ne.s32.totalorder %s3432_s8, %s2593_s10  ;;  %p2597_p11 = scmp.lt.u32.totalorder %s2593_s10, %s3432_s8 }
 0x49e   :  { %p2599_p12 = pnand %p2597_p11, %p2594_p10 }
 0x4a0   :  { %2602 = shalt.err (!%p2599_p12)
}
 0x4a1   :  { %1917 = dma.vmem_to_hbm [thread:$0]  %s1915_s27, 32, %s3432_s8, [#allocation6]   ;;  %vm1906_vm5 = vcmask 1024  }
 0x4c6   :  { %v1904_v8 = vpop.xlane.xlu1 %1903 }
 0x526   :  { %v1880_v50 = vpop.xlane.xlu0 %1879 }
 0x527   :  { %2567 = vlog2.f32 %v1880_v50 }
 0x531   :  { %v2568_v5 = vpop.eup %2567 }
 0x532   :  { %v1882_v6 = vmul.f32 0.6931472, %v2568_v5 }
 0x534   :  { %v1883_v7 = vadd.f32 %v1882_v6, %v1842_v47 }
 0x536   :  { %v1905_v9 = vsub.f32 %v1883_v7, %v1904_v8 }
 0x538   :  { %1907 = vst.msk [vmem:[%s3433_s9] sm:$0x3] %vm1906_vm5, %v1905_v9 }
 0x539   :  { %2605 = dma.done.wait [#allocation6], 32  }
 0x53a   :  { %2606 = vsyncadd [#allocation6], 4294967264 }
 0x53b   :  { %1925 = vsyncpa [#allocation6], 1 }

</bundles_post_ra>
